<compile_context>
chip_gen: v6e
topology: v6e:2x2x1
jax: 0.10.0
libtpu: 0.0.40
codegen_flags: <defaults>
</compile_context>

<pallas_src>
import functools

import jax
import jax.numpy as jnp
from jax.experimental import pallas as pl
from jax.experimental.pallas import tpu as pltpu

LANE = 128
SUB = 8 * LANE  # minimal (8, 128) tile = 1024 elements


def _bce_dice_kernel(x_ref, t_ref, o_ref, acc_ref, *, n_elems, tm, bce_w, dice_w):
    i = pl.program_id(0)

    @pl.when(i == 0)
    def _():
        acc_ref[...] = jnp.zeros_like(acc_ref)

    # Validity mask for the tail (covers both the <1024-elem wrapper pad and a
    # partial last grid block, whose OOB rows may contain garbage).
    # NOTE: int32 indexing -> assumes < 2**31 elements.
    rem = n_elems - i * (tm * LANE)                       # scalar int32
    row_ids = jax.lax.broadcasted_iota(jnp.int32, (tm, LANE), 0)
    lane_ids = jax.lax.broadcasted_iota(jnp.int32, (tm, LANE), 1)
    valid = (row_ids * LANE + lane_ids) < rem
    vf = valid.astype(jnp.float32)

    # Clamp before any transcendental so garbage in OOB rows can't produce NaN.
    x = jnp.where(valid, x_ref[...].astype(jnp.float32), 0.0)
    t = jnp.where(valid, t_ref[...].astype(jnp.float32), 0.0)

    # Single EUP exp per element, reused for BCE and sigmoid.
    e = jnp.exp(-jnp.abs(x))
    # Numerically-stable BCE with logits: max(x,0) - x*t + log(1 + exp(-|x|))
    bce = (jnp.maximum(x, 0.0) - x * t + jnp.log1p(e)) * vf
    r = 1.0 / (1.0 + e)
    probs = jnp.where(x >= 0.0, r, e * r) * vf
    tgt = t  # already zeroed on invalid elements

    # Fold (tm, 128) -> (8, 128): pure VPU adds over natural (8,128) tiles.
    def fold(v):
        return v.reshape(tm // 8, 8, LANE).sum(axis=0)

    acc_ref[0] += fold(bce)
    acc_ref[1] += fold(probs)
    acc_ref[2] += fold(tgt)
    acc_ref[3] += fold(probs * tgt)

    # Finalize (cross-lane reductions, divisions, store) only on the last step.
    @pl.when(i == pl.num_programs(0) - 1)
    def _():
        bce_sum = jnp.sum(acc_ref[0])
        p_sum = jnp.sum(acc_ref[1])
        t_sum = jnp.sum(acc_ref[2])
        inter = jnp.sum(acc_ref[3])

        bce_mean = bce_sum / float(n_elems)
        dice_loss = 1.0 - (2.0 * inter + 1.0) / (p_sum + t_sum + 1.0)
        loss = bce_w * bce_mean + dice_w * dice_loss
        o_ref[...] = jnp.full((1, 1), loss, dtype=jnp.float32)


def bce_dice_loss(inputs, targets, bce_weight=0.5, dice_weight=0.5, tm=4096):
    """BCEDiceLoss forward. inputs: logits (any shape), targets: same shape (0/1)."""
    n = int(inputs.size)
    x = inputs.reshape(-1)
    t = targets.reshape(-1)

    # Pad only to the minimal (8,128) tile boundary (<1024 elems); this is a
    # no-op for typical NCHW segmentation shapes where n % 1024 == 0.
    n_pad = pl.cdiv(n, SUB) * SUB
    if n_pad != n:
        x = jnp.pad(x, (0, n_pad - n))
        t = jnp.pad(t, (0, n_pad - n))

    rows = n_pad // LANE            # multiple of 8
    tm = min(int(tm), rows)
    tm = max(8, (tm // 8) * 8)      # multiple of 8 (sublane tiling)
    grid = pl.cdiv(rows, tm)        # partial last block handled by in-kernel mask

    x2 = x.reshape(rows, LANE)
    t2 = t.reshape(rows, LANE)

    kernel = functools.partial(
        _bce_dice_kernel,
        n_elems=n,
        tm=tm,
        bce_w=float(bce_weight),
        dice_w=float(dice_weight),
    )

    # TODO(synk): on v7x a leading "parallel" grid axis of size 2 with per-core
    # partial-sum outputs would use both TensorCores (~2x); kept single-core
    # here for simplicity/robustness.
    out = pl.pallas_call(
        kernel,
        out_shape=jax.ShapeDtypeStruct((1, 1), jnp.float32),
        grid_spec=pltpu.PrefetchScalarGridSpec(
            num_scalar_prefetch=0,
            grid=(grid,),
            in_specs=[
                pl.BlockSpec((tm, LANE), lambda i: (i, 0)),
                pl.BlockSpec((tm, LANE), lambda i: (i, 0)),
            ],
            out_specs=pl.BlockSpec((1, 1), lambda i: (0, 0)),
            scratch_shapes=[pltpu.VMEM((4, 8, LANE), jnp.float32)],
        ),
        compiler_params=pltpu.CompilerParams(dimension_semantics=("arbitrary",)),
    )(x2, t2)

    return out[0, 0]


def _reference(inputs, targets, bce_weight=0.5, dice_weight=0.5):
    x = inputs.astype(jnp.float32)
    t = targets.astype(jnp.float32)
    bce = jnp.mean(jnp.maximum(x, 0.0) - x * t + jnp.log1p(jnp.exp(-jnp.abs(x))))
    p = jax.nn.sigmoid(x).reshape(-1)
    tf = t.reshape(-1)
    inter = jnp.sum(p * tf)
    dice = 1.0 - (2.0 * inter + 1.0) / (jnp.sum(p) + jnp.sum(tf) + 1.0)
    return bce_weight * bce + dice_weight * dice


if __name__ == "__main__":
    key = jax.random.PRNGKey(0)
    k1, k2 = jax.random.split(key)
    # Small shapes consistent with a segmentation logit map: (N, C, H, W)
    inputs = jax.random.normal(k1, (2, 4, 16, 16), dtype=jnp.float32)
    targets = jax.random.bernoulli(k2, 0.5, (2, 4, 16, 16)).astype(jnp.float32)

    loss = bce_dice_loss(inputs, targets)
    loss = jax.block_until_ready(loss)

    ref = jax.block_until_ready(_reference(inputs, targets))
    assert jnp.allclose(loss, ref, rtol=1e-5, atol=1e-5), (loss, ref)
    print("KERNEL_OK")
</pallas_src>

<mosaic_0001>
module attributes {stable_mosaic.version = 11 : i64} {
  func.func @_bce_dice_kernel(%arg0: i32, %arg1: memref<16x128xf32, #tpu.memory_space<vmem>>, %arg2: memref<16x128xf32, #tpu.memory_space<vmem>>, %arg3: memref<1x1xf32, #tpu.memory_space<vmem>>, %arg4: memref<4x8x128xf32, #tpu.memory_space<vmem>>) attributes {dimension_semantics = [#tpu.dimension_semantics<arbitrary>], iteration_bounds = array<i64: 1>, scalar_prefetch = 0 : i64, scratch_operands = 1 : i64, tpu.core_type = #tpu.core_type<tc>, window_params = [{transform_indices = @transform_0, window_bounds = array<i64: 16, 128>}, {transform_indices = @transform_1, window_bounds = array<i64: 16, 128>}, {pipeline_mode = #tpu.pipeline_mode<synchronous>, transform_indices = @transform_2, window_bounds = array<i64: 1, 1>}]} {
    %c0_i32 = arith.constant 0 : i32
    %0 = arith.cmpi eq, %arg0, %c0_i32 : i32
    %1 = arith.extui %0 : i1 to i32
    %c0_i32_0 = arith.constant 0 : i32
    %2 = arith.cmpi ne, %1, %c0_i32_0 : i32
    scf.if %2 {
      %cst_38 = arith.constant 0.000000e+00 : f32
      %76 = vector.broadcast %cst_38 : f32 to vector<4x8x128xf32>
      %c0_39 = arith.constant 0 : index
      %c0_40 = arith.constant 0 : index
      %c0_41 = arith.constant 0 : index
      %77 = vector.load %arg4[%c0_39, %c0_40, %c0_41] : memref<4x8x128xf32, #tpu.memory_space<vmem>>, vector<4x8x128xf32>
      tpu.vector_store %arg4[%c0_39, %c0_40, %c0_41], %76 {strides = array<i32>} : memref<4x8x128xf32, #tpu.memory_space<vmem>>, vector<4x8x128xf32>,
    } else {
    }
    %c2048_i32 = arith.constant 2048 : i32
    %3 = arith.muli %arg0, %c2048_i32 : i32
    %c2048_i32_1 = arith.constant 2048 : i32
    %4 = arith.subi %c2048_i32_1, %3 : i32
    %5 = tpu.iota {dimensions = array<i32: 0>} : vector<16x128xi32>
    %6 = tpu.iota {dimensions = array<i32: 1>} : vector<16x128xi32>
    %c128_i32 = arith.constant 128 : i32
    %7 = vector.broadcast %c128_i32 : i32 to vector<16x128xi32>
    %8 = arith.muli %5, %7 : vector<16x128xi32>
    %9 = arith.addi %8, %6 : vector<16x128xi32>
    %10 = vector.broadcast %4 : i32 to vector<16x128xi32>
    %11 = arith.cmpi slt, %9, %10 : vector<16x128xi32>
    %12 = arith.extui %11 : vector<16x128xi1> to vector<16x128xi32>
    %13 = arith.sitofp %12 : vector<16x128xi32> to vector<16x128xf32>
    %c0 = arith.constant 0 : index
    %c0_2 = arith.constant 0 : index
    %14 = vector.load %arg1[%c0, %c0_2] : memref<16x128xf32, #tpu.memory_space<vmem>>, vector<16x128xf32>
    %cst = arith.constant 0.000000e+00 : f32
    %15 = vector.broadcast %cst : f32 to vector<16x128xf32>
    %16 = arith.select %11, %14, %15 : vector<16x128xi1>, vector<16x128xf32>
    %c0_3 = arith.constant 0 : index
    %c0_4 = arith.constant 0 : index
    %17 = vector.load %arg2[%c0_3, %c0_4] : memref<16x128xf32, #tpu.memory_space<vmem>>, vector<16x128xf32>
    %cst_5 = arith.constant 0.000000e+00 : f32
    %18 = vector.broadcast %cst_5 : f32 to vector<16x128xf32>
    %19 = arith.select %11, %17, %18 : vector<16x128xi1>, vector<16x128xf32>
    %20 = math.absf %16 : vector<16x128xf32>
    %cst_6 = arith.constant 0.000000e+00 : f32
    %21 = vector.broadcast %cst_6 : f32 to vector<16x128xf32>
    %22 = arith.subf %21, %20 : vector<16x128xf32>
    %23 = math.exp %22 : vector<16x128xf32>
    %cst_7 = arith.constant 0.000000e+00 : f32
    %24 = vector.broadcast %cst_7 : f32 to vector<16x128xf32>
    %25 = arith.maximumf %16, %24 : vector<16x128xf32>
    %26 = arith.mulf %16, %19 : vector<16x128xf32>
    %27 = arith.subf %25, %26 : vector<16x128xf32>
    %28 = math.log1p %23 : vector<16x128xf32>
    %29 = arith.addf %27, %28 : vector<16x128xf32>
    %30 = arith.mulf %29, %13 : vector<16x128xf32>
    %cst_8 = arith.constant 1.000000e+00 : f32
    %31 = vector.broadcast %cst_8 : f32 to vector<16x128xf32>
    %32 = arith.addf %31, %23 : vector<16x128xf32>
    %cst_9 = arith.constant 1.000000e+00 : f32
    %33 = vector.broadcast %cst_9 : f32 to vector<16x128xf32>
    %34 = arith.divf %33, %32 : vector<16x128xf32>
    %cst_10 = arith.constant 0.000000e+00 : f32
    %35 = vector.broadcast %cst_10 : f32 to vector<16x128xf32>
    %36 = arith.cmpf oge, %16, %35 : vector<16x128xf32>
    %37 = arith.mulf %23, %34 : vector<16x128xf32>
    %38 = arith.select %36, %34, %37 : vector<16x128xi1>, vector<16x128xf32>
    %39 = arith.mulf %38, %13 : vector<16x128xf32>
    %c0_11 = arith.constant 0 : index
    %c0_12 = arith.constant 0 : index
    %c0_13 = arith.constant 0 : index
    %40 = vector.load %arg4[%c0_11, %c0_12, %c0_13] : memref<4x8x128xf32, #tpu.memory_space<vmem>>, vector<1x8x128xf32>
    %41 = vector.shape_cast %40 : vector<1x8x128xf32> to vector<8x128xf32>
    %42 = vector.shape_cast %30 : vector<16x128xf32> to vector<2x8x128xf32>
    %cst_14 = arith.constant dense<0.000000e+00> : vector<8x128xf32>
    %43 = vector.multi_reduction <add>, %42, %cst_14 [0] : vector<2x8x128xf32> to vector<8x128xf32>
    %44 = arith.addf %41, %43 : vector<8x128xf32>
    %c0_15 = arith.constant 0 : index
    %c0_16 = arith.constant 0 : index
    %c0_17 = arith.constant 0 : index
    %45 = vector.load %arg4[%c0_15, %c0_16, %c0_17] : memref<4x8x128xf32, #tpu.memory_space<vmem>>, vector<1x8x128xf32>
    %46 = vector.shape_cast %45 : vector<1x8x128xf32> to vector<8x128xf32>
    %47 = vector.shape_cast %44 : vector<8x128xf32> to vector<1x8x128xf32>
    tpu.vector_store %arg4[%c0_15, %c0_16, %c0_17], %47 {strides = array<i32>} : memref<4x8x128xf32, #tpu.memory_space<vmem>>, vector<1x8x128xf32>,
    %c1 = arith.constant 1 : index
    %c0_18 = arith.constant 0 : index
    %c0_19 = arith.constant 0 : index
    %48 = vector.load %arg4[%c1, %c0_18, %c0_19] : memref<4x8x128xf32, #tpu.memory_space<vmem>>, vector<1x8x128xf32>
    %49 = vector.shape_cast %48 : vector<1x8x128xf32> to vector<8x128xf32>
    %50 = vector.shape_cast %39 : vector<16x128xf32> to vector<2x8x128xf32>
    %cst_20 = arith.constant dense<0.000000e+00> : vector<8x128xf32>
    %51 = vector.multi_reduction <add>, %50, %cst_20 [0] : vector<2x8x128xf32> to vector<8x128xf32>
    %52 = arith.addf %49, %51 : vector<8x128xf32>
    %c1_21 = arith.constant 1 : index
    %c0_22 = arith.constant 0 : index
    %c0_23 = arith.constant 0 : index
    %53 = vector.load %arg4[%c1_21, %c0_22, %c0_23] : memref<4x8x128xf32, #tpu.memory_space<vmem>>, vector<1x8x128xf32>
    %54 = vector.shape_cast %53 : vector<1x8x128xf32> to vector<8x128xf32>
    %55 = vector.shape_cast %52 : vector<8x128xf32> to vector<1x8x128xf32>
    tpu.vector_store %arg4[%c1_21, %c0_22, %c0_23], %55 {strides = array<i32>} : memref<4x8x128xf32, #tpu.memory_space<vmem>>, vector<1x8x128xf32>,
    %c2 = arith.constant 2 : index
    %c0_24 = arith.constant 0 : index
    %c0_25 = arith.constant 0 : index
    %56 = vector.load %arg4[%c2, %c0_24, %c0_25] : memref<4x8x128xf32, #tpu.memory_space<vmem>>, vector<1x8x128xf32>
    %57 = vector.shape_cast %56 : vector<1x8x128xf32> to vector<8x128xf32>
    %58 = vector.shape_cast %19 : vector<16x128xf32> to vector<2x8x128xf32>
    %cst_26 = arith.constant dense<0.000000e+00> : vector<8x128xf32>
    %59 = vector.multi_reduction <add>, %58, %cst_26 [0] : vector<2x8x128xf32> to vector<8x128xf32>
    %60 = arith.addf %57, %59 : vector<8x128xf32>
    %c2_27 = arith.constant 2 : index
    %c0_28 = arith.constant 0 : index
    %c0_29 = arith.constant 0 : index
    %61 = vector.load %arg4[%c2_27, %c0_28, %c0_29] : memref<4x8x128xf32, #tpu.memory_space<vmem>>, vector<1x8x128xf32>
    %62 = vector.shape_cast %61 : vector<1x8x128xf32> to vector<8x128xf32>
    %63 = vector.shape_cast %60 : vector<8x128xf32> to vector<1x8x128xf32>
    tpu.vector_store %arg4[%c2_27, %c0_28, %c0_29], %63 {strides = array<i32>} : memref<4x8x128xf32, #tpu.memory_space<vmem>>, vector<1x8x128xf32>,
    %c3 = arith.constant 3 : index
    %c0_30 = arith.constant 0 : index
    %c0_31 = arith.constant 0 : index
    %64 = vector.load %arg4[%c3, %c0_30, %c0_31] : memref<4x8x128xf32, #tpu.memory_space<vmem>>, vector<1x8x128xf32>
    %65 = vector.shape_cast %64 : vector<1x8x128xf32> to vector<8x128xf32>
    %66 = arith.mulf %39, %19 : vector<16x128xf32>
    %67 = vector.shape_cast %66 : vector<16x128xf32> to vector<2x8x128xf32>
    %cst_32 = arith.constant dense<0.000000e+00> : vector<8x128xf32>
    %68 = vector.multi_reduction <add>, %67, %cst_32 [0] : vector<2x8x128xf32> to vector<8x128xf32>
    %69 = arith.addf %65, %68 : vector<8x128xf32>
    %c3_33 = arith.constant 3 : index
    %c0_34 = arith.constant 0 : index
    %c0_35 = arith.constant 0 : index
    %70 = vector.load %arg4[%c3_33, %c0_34, %c0_35] : memref<4x8x128xf32, #tpu.memory_space<vmem>>, vector<1x8x128xf32>
    %71 = vector.shape_cast %70 : vector<1x8x128xf32> to vector<8x128xf32>
    %72 = vector.shape_cast %69 : vector<8x128xf32> to vector<1x8x128xf32>
    tpu.vector_store %arg4[%c3_33, %c0_34, %c0_35], %72 {strides = array<i32>} : memref<4x8x128xf32, #tpu.memory_space<vmem>>, vector<1x8x128xf32>,
    %c0_i32_36 = arith.constant 0 : i32
    %73 = arith.cmpi eq, %arg0, %c0_i32_36 : i32
    %74 = arith.extui %73 : i1 to i32
    %c0_i32_37 = arith.constant 0 : i32
    %75 = arith.cmpi ne, %74, %c0_i32_37 : i32
    scf.if %75 {
      %c0_38 = arith.constant 0 : index
      %c0_39 = arith.constant 0 : index
      %c0_40 = arith.constant 0 : index
      %76 = vector.load %arg4[%c0_38, %c0_39, %c0_40] : memref<4x8x128xf32, #tpu.memory_space<vmem>>, vector<1x8x128xf32>
      %77 = vector.shape_cast %76 : vector<1x8x128xf32> to vector<8x128xf32>
      %78 = vector.shape_cast %77 : vector<8x128xf32> to vector<1x8x128xf32>
      %cst_41 = arith.constant dense<0.000000e+00> : vector<1xf32>
      %79 = vector.multi_reduction <add>, %78, %cst_41 [1, 2] : vector<1x8x128xf32> to vector<1xf32>
      %80 = vector.shape_cast %79 : vector<1xf32> to vector<1x1x1xf32>
      %81 = vector.extract %80[0, 0, 0] : f32 from vector<1x1x1xf32>
      %c1_42 = arith.constant 1 : index
      %c0_43 = arith.constant 0 : index
      %c0_44 = arith.constant 0 : index
      %82 = vector.load %arg4[%c1_42, %c0_43, %c0_44] : memref<4x8x128xf32, #tpu.memory_space<vmem>>, vector<1x8x128xf32>
      %83 = vector.shape_cast %82 : vector<1x8x128xf32> to vector<8x128xf32>
      %84 = vector.shape_cast %83 : vector<8x128xf32> to vector<1x8x128xf32>
      %cst_45 = arith.constant dense<0.000000e+00> : vector<1xf32>
      %85 = vector.multi_reduction <add>, %84, %cst_45 [1, 2] : vector<1x8x128xf32> to vector<1xf32>
      %86 = vector.shape_cast %85 : vector<1xf32> to vector<1x1x1xf32>
      %87 = vector.extract %86[0, 0, 0] : f32 from vector<1x1x1xf32>
      %c2_46 = arith.constant 2 : index
      %c0_47 = arith.constant 0 : index
      %c0_48 = arith.constant 0 : index
      %88 = vector.load %arg4[%c2_46, %c0_47, %c0_48] : memref<4x8x128xf32, #tpu.memory_space<vmem>>, vector<1x8x128xf32>
      %89 = vector.shape_cast %88 : vector<1x8x128xf32> to vector<8x128xf32>
      %90 = vector.shape_cast %89 : vector<8x128xf32> to vector<1x8x128xf32>
      %cst_49 = arith.constant dense<0.000000e+00> : vector<1xf32>
      %91 = vector.multi_reduction <add>, %90, %cst_49 [1, 2] : vector<1x8x128xf32> to vector<1xf32>
      %92 = vector.shape_cast %91 : vector<1xf32> to vector<1x1x1xf32>
      %93 = vector.extract %92[0, 0, 0] : f32 from vector<1x1x1xf32>
      %c3_50 = arith.constant 3 : index
      %c0_51 = arith.constant 0 : index
      %c0_52 = arith.constant 0 : index
      %94 = vector.load %arg4[%c3_50, %c0_51, %c0_52] : memref<4x8x128xf32, #tpu.memory_space<vmem>>, vector<1x8x128xf32>
      %95 = vector.shape_cast %94 : vector<1x8x128xf32> to vector<8x128xf32>
      %96 = vector.shape_cast %95 : vector<8x128xf32> to vector<1x8x128xf32>
      %cst_53 = arith.constant dense<0.000000e+00> : vector<1xf32>
      %97 = vector.multi_reduction <add>, %96, %cst_53 [1, 2] : vector<1x8x128xf32> to vector<1xf32>
      %98 = vector.shape_cast %97 : vector<1xf32> to vector<1x1x1xf32>
      %99 = vector.extract %98[0, 0, 0] : f32 from vector<1x1x1xf32>
      %cst_54 = arith.constant 2.048000e+03 : f32
      %100 = arith.divf %81, %cst_54 : f32
      %cst_55 = arith.constant 2.000000e+00 : f32
      %101 = arith.mulf %cst_55, %99 : f32
      %cst_56 = arith.constant 1.000000e+00 : f32
      %102 = arith.addf %101, %cst_56 : f32
      %103 = arith.addf %87, %93 : f32
      %cst_57 = arith.constant 1.000000e+00 : f32
      %104 = arith.addf %103, %cst_57 : f32
      %105 = arith.divf %102, %104 : f32
      %cst_58 = arith.constant 1.000000e+00 : f32
      %106 = arith.subf %cst_58, %105 : f32
      %cst_59 = arith.constant 5.000000e-01 : f32
      %107 = arith.mulf %cst_59, %100 : f32
      %cst_60 = arith.constant 5.000000e-01 : f32
      %108 = arith.mulf %cst_60, %106 : f32
      %109 = arith.addf %107, %108 : f32
      %110 = vector.broadcast %109 : f32 to vector<1x1xf32>
      %c0_61 = arith.constant 0 : index
      %c0_62 = arith.constant 0 : index
      %111 = vector.load %arg3[%c0_61, %c0_62] : memref<1x1xf32, #tpu.memory_space<vmem>>, vector<1x1xf32>
      tpu.vector_store %arg3[%c0_61, %c0_62], %110 {strides = array<i32>} : memref<1x1xf32, #tpu.memory_space<vmem>>, vector<1x1xf32>,
    } else {
    }
    return
  }
  func.func @transform_0(%arg0: i32) -> (i32, i32) {
    %c0_i32 = arith.constant 0 : i32
    %c0_i32_0 = arith.constant 0 : i32
    return %arg0, %c0_i32 : i32, i32
  }
  func.func @transform_1(%arg0: i32) -> (i32, i32) {
    %c0_i32 = arith.constant 0 : i32
    %c0_i32_0 = arith.constant 0 : i32
    return %arg0, %c0_i32 : i32, i32
  }
  func.func @transform_2(%arg0: i32) -> (i32, i32) {
    %c0_i32 = arith.constant 0 : i32
    %c0_i32_0 = arith.constant 0 : i32
    %c0_i32_1 = arith.constant 0 : i32
    return %c0_i32, %c0_i32_0 : i32, i32
  }
}

</mosaic_0001>

<bundles_post_ra>
// kernel: tpu_custom_call.1
= control target key start
LH: loop header
LB: loop body
LE: loop exit
PB: predicated region body
PF: predicated region fallthrough
CT: control target
= control target key end

     0   :  { %7 = vsyncpa [#allocation4], 0  ;;  %s356_s0 = inlined_call_operand.hbm [shape: f32[16,128], index: 0, kind: input, shape index: {}]   ;;  %s357_s1 = inlined_call_operand.hbm [shape: f32[16,128], index: 1, kind: input, shape index: {}]   ;;  %s358_s2 = inlined_call_operand.hbm [shape: f32[1,1], index: 2, kind: output, shape index: {}]  }
   0x1   :  { %8 = vsyncpa [#allocation7], 0 }
   0x2   :  { %9 = vsyncpa [#allocation5], 0  ;;  %s320_s9 = smov [#allocation3]  }
   0x3   :  { %s15_s10 = sshll.u32 %s320_s9, 4  ;;  %s16_s10 = int_to_ptr.vmem [resolvable:$true] %s15_s10 }
   0x4   :  { %s262_s11 = scalar_lea.vmem %s16_s10, 256  ;;  %p267_p1 = scmp.lt.s32.totalorder %s16_s10, %s16_s10 }
   0x5   :  { %p263_p0 = scmp.ne.s32.totalorder %s16_s10, %s262_s11  ;;  %p268_p2 = scmp.lt.s32.totalorder %s262_s11, %s262_s11 }
   0x7   :  { %p269_p3 = por %p268_p2, %p267_p1 }
   0x9   :  { %p270_p4 = pnand %p269_p3, %p263_p0 }
   0xb   :  { %273 = shalt.err (!%p270_p4)
}
   0xc   :  { %s321_s12 = smov 128   ;;  %s322_s13 = smov 8  }
   0xd   :  { %21 = dma.hbm_to_vmem [thread:$0]  %s356_s0, 256, %s16_s10, [#allocation4], %s321_s12, %s321_s12, %s322_s13  }
   0xe   :  { %s323_s16 = smov [#allocation6]  }
   0xf   :  { %s27_s17 = sshll.u32 %s323_s16, 4  ;;  %s28_s17 = int_to_ptr.vmem [resolvable:$true] %s27_s17 }
  0x10   :  { %s282_s18 = scalar_lea.vmem %s28_s17, 256  ;;  %p287_p6 = scmp.lt.s32.totalorder %s28_s17, %s28_s17 }
  0x11   :  { %p283_p5 = scmp.ne.s32.totalorder %s28_s17, %s282_s18  ;;  %p288_p7 = scmp.lt.s32.totalorder %s282_s18, %s282_s18 }
  0x13   :  { %p289_p8 = por %p288_p7, %p287_p6 }
  0x15   :  { %p290_p9 = pnand %p289_p8, %p283_p5 }
  0x17   :  { %293 = shalt.err (!%p290_p9)
}
  0x18   :  { %33 = dma.hbm_to_vmem [thread:$0]  %s357_s1, 256, %s28_s17, [#allocation7], %s321_s12, %s321_s12, %s322_s13  }
  0x19   :  { %314 = dma.done.wait [#allocation4], 256  }
  0x1a   :  { %315 = vsyncadd [#allocation4], 4294967040 }
  0x1b   :  { %316 = dma.done.wait [#allocation7], 256  }
  0x1c   :  { %317 = vsyncadd [#allocation7], 4294967040  ;;  %v50_v0 = vlaneseq  ;;  %v66_v7 = vld [vmem:[#allocation3] sm:$0xff]  ;;  %v70_v9 = vld [vmem:[#allocation6] sm:$0xff]  ;;  %v324_v47 = vmov 0.0   ;;  %s325_s5 = smov [#allocation8]  }
  0x1d   :  { %v71_v10 = vld [vmem:[#allocation6 + $0x8] sm:$0xff]  ;;  %v67_v11 = vld [vmem:[#allocation3 + $0x8] sm:$0xff]  ;;  %s212_s6 = sshll.u32 %s325_s5, 4  ;;  %vm204_vm6 = vcmask 0   ;;  %s213_s6 = int_to_ptr.vmem [resolvable:$true] %s212_s6 }
  0x1e   :  { %v51_v1 = vshrl.u32 %v50_v0, 7  ;;  %v54_v2 = vand.u32 127, %v50_v0  ;;  %s294_s8 = scalar_lea.vmem %s213_s6, 16  ;;  %s298_s9 = scalar_lea.vmem %s213_s6, 32 }
  0x1f   :  { %p295_p10 = scmp.ne.s32.totalorder %s213_s6, %s294_s8  ;;  %p299_p11 = scmp.lt.s32.totalorder %s213_s6, %s213_s6 }
  0x20   :  { %v52_v3 = vadd.s32 8, %v51_v1  ;;  %v55_v4 = vmul.u32 128, %v51_v1  ;;  %p300_p12 = scmp.lt.s32.totalorder %s298_s9, %s294_s8 }
  0x22   :  { %v56_v5 = vmul.u32 128, %v52_v3  ;;  %v57_v6 = vadd.s32 %v55_v4, %v54_v2  ;;  %p301_p13 = por %p300_p12, %p299_p11 }
  0x24   :  { %v58_v8 = vadd.s32 %v56_v5, %v54_v2  ;;  %vm60_vm0 = vcmp.lt.s32.totalorder %v57_v6, 2048  ;;  %p302_p0 = pnand %p301_p13, %p295_p10 }
  0x25   :  { %v68_v12 = vsel %vm60_vm0, %v66_v7, 0.0  ;;  %v72_v14 = vsel %vm60_vm0, %v70_v9, 0.0  ;;  %v222_v48 = vsel %vm60_vm0, 1.0, %v324_v47 }
  0x26   :  { %vm61_vm1 = vcmp.lt.s32.totalorder %v58_v8, 2048  ;;  %v74_v13 = vand.u32 2147483647, %v68_v12  ;;  %v84_v30 = vmul.f32 %v72_v14, %v68_v12  ;;  %v82_v31 = vmax.f32 %v68_v12, 0.0 }
  0x27   :  { %v73_v15 = vsel %vm61_vm1, %v71_v10, 0.0  ;;  %v69_v16 = vsel %vm61_vm1, %v67_v11, 0.0  ;;  %vm116_vm3 = vcmp.ge.f32.partialorder %v68_v12, 0.0  ;;  %v223_v54 = vsel %vm61_vm1, 1.0, %v324_v47 }
  0x28   :  { %v135_v17 = vadd.f32 %v73_v15, %v72_v14  ;;  %v75_v18 = vand.u32 2147483647, %v69_v16  ;;  %v76_v19 = vsub.f32 0.0, %v74_v13  ;;  %v85_v34 = vmul.f32 %v73_v15, %v69_v16 }
  0x29   :  { %v83_v35 = vmax.f32 %v69_v16, 0.0  ;;  %v86_v39 = vsub.f32 %v82_v31, %v84_v30  ;;  %vm117_vm5 = vcmp.ge.f32.partialorder %v69_v16, 0.0 }
  0x2a   :  { %169 = vadd.xlane.f32.xlu1 %v135_v17  ;;  %v77_v20 = vsub.f32 0.0, %v75_v18  ;;  %v78_v21 = vmul.f32 1.442695, %v76_v19 }
  0x2b   :  { %v87_v44 = vsub.f32 %v83_v35, %v85_v34 }
  0x2c   :  { %240 = vpow2.f32 %v78_v21  ;;  %v80_v22 = vmul.f32 1.442695, %v77_v20 }
  0x2e   :  { %242 = vpow2.f32 %v80_v22 }
  0x39   :  { %v241_v23 = vpop.eup %240 }
  0x3a   :  { %v88_v24 = vadd.f32 1.0, %v241_v23  ;;  %v91_v27 = vmul.f32 -0.5, %v241_v23  ;;  %v94_v32 = vand.u32 2147483647, %v241_v23 }
  0x3b   :  { %v243_v25 = vpop.eup %242 }
  0x3c   :  { %244 = vlog2.f32 %v88_v24  ;;  %v97_v26 = vadd.f32 1.0, %v243_v25  ;;  %v100_v28 = vmul.f32 -0.5, %v243_v25  ;;  %v92_v29 = vadd.f32 1.0, %v91_v27 }
  0x3d   :  { %246 = vrcp.f32 %v88_v24  ;;  %v103_v36 = vand.u32 2147483647, %v243_v25  ;;  %vm95_vm2 = vcmp.lt.f32.partialorder %v94_v32, 0.0004427343 }
  0x3e   :  { %248 = vlog2.f32 %v97_v26  ;;  %v101_v33 = vadd.f32 1.0, %v100_v28  ;;  %v93_v37 = vmul.f32 %v241_v23, %v92_v29 }
  0x3f   :  { %250 = vrcp.f32 %v97_v26  ;;  %vm104_vm4 = vcmp.lt.f32.partialorder %v103_v36, 0.0004427343 }
  0x40   :  { %v102_v42 = vmul.f32 %v243_v25, %v101_v33 }
  0x49   :  { %v245_v38 = vpop.eup %244 }
  0x4a   :  { %v247_v40 = vpop.eup %246  ;;  %v90_v41 = vmul.f32 0.6931472, %v245_v38 }
  0x4b   :  { %v249_v43 = vpop.eup %248  ;;  %v118_v45 = vmul.f32 %v247_v40, %v241_v23 }
  0x4c   :  { %v251_v46 = vpop.eup %250  ;;  %v96_v49 = vsel %vm95_vm2, %v93_v37, %v90_v41  ;;  %v99_v50 = vmul.f32 0.6931472, %v249_v43 }
  0x4d   :  { %v106_v51 = vadd.f32 %v96_v49, %v86_v39  ;;  %v119_v52 = vmul.f32 %v251_v46, %v243_v25  ;;  %v120_v53 = vsel %vm116_vm3, %v247_v40, %v118_v45 }
  0x4e   :  { %v105_v55 = vsel %vm104_vm4, %v102_v42, %v99_v50  ;;  %v122_v56 = vmul.f32 %v222_v48, %v120_v53 }
  0x4f   :  { %v107_v57 = vadd.f32 %v105_v55, %v87_v44  ;;  %v108_v58 = vmul.f32 %v222_v48, %v106_v51  ;;  %v121_v59 = vsel %vm117_vm5, %v251_v46, %v119_v52 }
  0x50   :  { %v123_v60 = vmul.f32 %v223_v54, %v121_v59  ;;  %v140_v61 = vmul.f32 %v122_v56, %v72_v14 }
  0x51   :  { %v109_v62 = vmul.f32 %v223_v54, %v107_v57 }
  0x52   :  { %v141_v63 = vmul.f32 %v123_v60, %v73_v15  ;;  %v130_v2 = vadd.f32 %v123_v60, %v122_v56 }
  0x53   :  { %v125_v0 = vadd.f32 %v109_v62, %v108_v58 }
  0x54   :  { %v142_v1 = vadd.f32 %v141_v63, %v140_v61 }
  0x55   :  { %149 = vadd.xlane.f32.xlu0 %v125_v0 }
  0x56   :  { %179 = vadd.xlane.f32.xlu1 %v142_v1 }
  0x59   :  { %159 = vadd.xlane.f32.xlu0 %v130_v2 }
  0xb3   :  { %v170_v3 = vpop.xlane.xlu1 %169 }
  0xb4   :  { %v171_v4 = vrot.slane %v170_v3, 4 }
  0xb6   :  { %v172_v5 = vadd.f32 %v171_v4, %v170_v3 }
  0xb8   :  { %v173_v11 = vrot.slane %v172_v5, 2 }
  0xba   :  { %v174_v19 = vadd.f32 %v173_v11, %v172_v5 }
  0xbc   :  { %v175_v26 = vrot.slane %v174_v19, 1 }
  0xbe   :  { %v176_v30 = vadd.f32 %v175_v26, %v174_v19 }
  0xde   :  { %v150_v6 = vpop.xlane.xlu0 %149 }
  0xdf   :  { %v151_v7 = vrot.slane %v150_v6, 4  ;;  %v180_v8 = vpop.xlane.xlu1 %179 }
  0xe0   :  { %v181_v9 = vrot.slane %v180_v8, 4 }
  0xe1   :  { %v152_v10 = vadd.f32 %v151_v7, %v150_v6 }
  0xe2   :  { %v160_v12 = vpop.xlane.xlu0 %159  ;;  %v182_v13 = vadd.f32 %v181_v9, %v180_v8 }
  0xe3   :  { %v153_v14 = vrot.slane %v152_v10, 2  ;;  %v161_v16 = vrot.slane %v160_v12, 4 }
  0xe4   :  { %v183_v15 = vrot.slane %v182_v13, 2 }
  0xe5   :  { %v162_v17 = vadd.f32 %v161_v16, %v160_v12  ;;  %v154_v18 = vadd.f32 %v153_v14, %v152_v10 }
  0xe6   :  { %v184_v20 = vadd.f32 %v183_v15, %v182_v13 }
  0xe7   :  { %v163_v21 = vrot.slane %v162_v17, 2  ;;  %v155_v22 = vrot.slane %v154_v18, 1 }
  0xe8   :  { %v185_v25 = vrot.slane %v184_v20, 1 }
  0xe9   :  { %v164_v23 = vadd.f32 %v163_v21, %v162_v17  ;;  %v156_v24 = vadd.f32 %v155_v22, %v154_v18 }
  0xea   :  { %v186_v29 = vadd.f32 %v185_v25, %v184_v20 }
  0xeb   :  { %224 = vpush %v156_v24  ;;  %v165_v27 = vrot.slane %v164_v23, 1 }
  0xed   :  { %v166_v28 = vadd.f32 %v165_v27, %v164_v23 }
  0xef   :  { %226 = vpush %v166_v28 }
  0xf0   :  { %228 = vpush %v176_v30 }
  0xf1   :  { %230 = vpush %v186_v29 }
 0x11c   :  { %s225_s0 = spop %224 }
 0x11d   :  { %s190_s27 = smul.f32 0.00048828125, %s225_s0 }
 0x11f   :  { %s200_s3 = smul.f32 0.5, %s190_s27 }
 0x120   :  { %s227_s1 = spop %226 }
 0x121   :  { %s229_s21 = spop %228 }
 0x122   :  { %s193_s22 = sadd.f32 %s229_s21, %s227_s1  ;;  %s231_s24 = spop %230 }
 0x123   :  { %s191_s25 = smul.f32 2.0, %s231_s24 }
 0x124   :  { %s194_s23 = sadd.f32 1.0, %s193_s22 }
 0x125   :  { %s192_s26 = sadd.f32 1.0, %s191_s25 }
 0x126   :  { %v195_v31 = vstv %s194_s23 }
 0x127   :  { %252 = vrcp.f32 %v195_v31 }
 0x134   :  { %v253_v32 = vpop.eup %252 }
 0x135   :  { %232 = vpush %v253_v32 }
 0x166   :  { %s233_s28 = spop %232 }
 0x167   :  { %s198_s29 = smul.f32 %s233_s28, %s192_s26 }
 0x169   :  { %s199_s30 = ssub.f32 1.0, %s198_s29 }
 0x16b   :  { %s201_s4 = smul.f32 0.5, %s199_s30 }
 0x16d   :  { %s202_s7 = sadd.f32 %s201_s4, %s200_s3 }
 0x16f   :  { %v203_v33 = vstv %s202_s7 }
 0x170   :  { %205 = vst.msk [vmem:[#allocation8] sm:$0x1] %vm204_vm6, %v203_v33 }
 0x171   :  { %305 = shalt.err (!%p302_p0)
}
 0x172   :  { %215 = dma.vmem_to_hbm [thread:$0]  %s213_s6, 16, %s358_s2, [#allocation5]  }
 0x173   :  { %318 = dma.done.wait [#allocation5], 16  }
 0x174   :  { %319 = vsyncadd [#allocation5], 4294967280 }
 0x175   :  { %219 = vsyncpa [#allocation4], 1 }
 0x176   :  { %220 = vsyncpa [#allocation7], 1 }
 0x177   :  { %221 = vsyncpa [#allocation5], 1 }

</bundles_post_ra>
